<compile_context>
chip_gen: v6e
topology: v6e:2x2x1
jax: 0.10.0
libtpu: 0.0.40
codegen_flags: <defaults>
</compile_context>

<pallas_src>
import functools

import jax
import jax.numpy as jnp
from jax.experimental import pallas as pl
from jax.experimental.pallas import tpu as pltpu

HIDDEN = 128          # hidden width of the Actor MLP (matches nn.Linear(_, 128))
LANE = 128            # TPU lane width; W3/b3 are padded to a multiple of this


def _round_up(x: int, m: int) -> int:
    return ((x + m - 1) // m) * m


def actor_kernel(s_ref, w1_ref, b1_ref, w2_ref, b2_ref, w3_ref, b3_ref, o_ref,
                 *, action_space: int):
    # state tile: (TB, S) f32 -> bf16 for the MXU
    x = s_ref[...].astype(jnp.bfloat16)

    # layer 1: Linear(S, 128) + ReLU   (f32 accumulate, f32 bias/ReLU)
    h = jnp.dot(x, w1_ref[...], preferred_element_type=jnp.float32) + b1_ref[...]
    h = jnp.maximum(h, 0.0)

    # layer 2: Linear(128, 128) + ReLU
    h = jnp.dot(h.astype(jnp.bfloat16), w2_ref[...],
                preferred_element_type=jnp.float32) + b2_ref[...]
    h = jnp.maximum(h, 0.0)

    # layer 3: Linear(128, A_pad) + ReLU (padded columns are zeros -> stay zero)
    h = jnp.dot(h.astype(jnp.bfloat16), w3_ref[...],
                preferred_element_type=jnp.float32) + b3_ref[...]
    h = jnp.maximum(h, 0.0)

    # Store only the real action columns -> 16x less output HBM traffic than
    # writing the 128-lane padded slab.
    o_ref[...] = h[:, :action_space]


@functools.partial(jax.jit, static_argnames=("action_space", "tb"))
def actor_forward(state, params, *, action_space: int, tb: int = 1024):
    """state: (B, S) f32.  params from init_actor_params.  Returns (B, A) f32."""
    w1, b1 = params["w1"], params["b1"]
    w2, b2 = params["w2"], params["b2"]
    w3, b3 = params["w3"], params["b3"]

    B, S = state.shape
    A = action_space
    A_pad = w3.shape[1]

    # Batch tile: multiple of 8 sublanes; capped so the grid keeps >=2 steps
    # (megacore split on v7x needs >=2 parallel grid steps) and never exceeds
    # the batch (rounded to 8).  No wrapper-side pad: pl.cdiv grid + Pallas
    # masking handles a ragged last tile.
    two_step_cap = _round_up(max(8, (B + 1) // 2), 8)
    tb = max(8, min(tb, two_step_cap, 1024))
    grid = (pl.cdiv(B, tb),)

    const = lambda i: (0, 0)      # weights / biases: same block every grid step
    batch = lambda i: (i, 0)      # state / output: walk the batch tiles

    flops = 2 * B * (S * HIDDEN + HIDDEN * HIDDEN + HIDDEN * A_pad)
    bytes_accessed = (
        state.size * 4 + B * A * 4                      # state read + narrow output write
        + (w1.size + w2.size + w3.size) * 2             # bf16 weights (read once)
        + (b1.size + b2.size + b3.size) * 4             # f32 biases
    )

    out = pl.pallas_call(
        functools.partial(actor_kernel, action_space=A),
        out_shape=jax.ShapeDtypeStruct((B, A), jnp.float32),
        grid=grid,
        in_specs=[
            pl.BlockSpec((tb, S), batch),          # state tile
            pl.BlockSpec((S, HIDDEN), const),      # W1 (VMEM-resident)
            pl.BlockSpec((1, HIDDEN), const),      # b1
            pl.BlockSpec((HIDDEN, HIDDEN), const), # W2
            pl.BlockSpec((1, HIDDEN), const),      # b2
            pl.BlockSpec((HIDDEN, A_pad), const),  # W3 (padded to 128 lanes for MXU)
            pl.BlockSpec((1, A_pad), const),       # b3
        ],
        out_specs=pl.BlockSpec((tb, A), batch),    # narrow (real-A) output
        compiler_params=pltpu.CompilerParams(
            dimension_semantics=("parallel",),      # megacore split on v7x
            vmem_limit_bytes=32 * 1024 * 1024,      # safe on v5e/v6e/v7x
        ),
        cost_estimate=pl.CostEstimate(
            flops=flops, transcendentals=0, bytes_accessed=bytes_accessed),
    )(state, w1, b1, w2, b2, w3, b3)

    return out


def init_actor_params(key, state_space, action_space):
    """PyTorch-Linear-style init (uniform +/- 1/sqrt(fan_in)).

    Weights are stored (in, out) in bf16; biases (1, out) in f32.  The output
    head (W3/b3) is zero-padded from `action_space` to a multiple of 128 lanes
    so the last matmul is lane-aligned for the MXU; the kernel stores only the
    real `action_space` columns.
    """
    ks = jax.random.split(key, 6)

    def lin(kw, kb, fan_in, fan_out):
        bound = 1.0 / jnp.sqrt(jnp.float32(fan_in))
        w = jax.random.uniform(kw, (fan_in, fan_out), jnp.float32, -bound, bound)
        b = jax.random.uniform(kb, (1, fan_out), jnp.float32, -bound, bound)
        return w.astype(jnp.bfloat16), b

    w1, b1 = lin(ks[0], ks[1], state_space, HIDDEN)
    w2, b2 = lin(ks[2], ks[3], HIDDEN, HIDDEN)
    w3, b3 = lin(ks[4], ks[5], HIDDEN, action_space)

    a_pad = _round_up(action_space, LANE)
    w3 = jnp.pad(w3, ((0, 0), (0, a_pad - action_space)))
    b3 = jnp.pad(b3, ((0, 0), (0, a_pad - action_space)))

    return {"w1": w1, "b1": b1, "w2": w2, "b2": b2, "w3": w3, "b3": b3}


def actor_reference(state, params, action_space):
    """Pure-JAX reference with the same bf16-input / f32-accumulate precision."""

    def lin_relu(x, w, b):
        y = jnp.dot(x.astype(jnp.bfloat16), w,
                    preferred_element_type=jnp.float32) + b
        return jnp.maximum(y, 0.0)

    h = lin_relu(state, params["w1"], params["b1"])
    h = lin_relu(h, params["w2"], params["b2"])
    h = lin_relu(h, params["w3"], params["b3"])
    return h[:, :action_space]


if __name__ == "__main__":
    key = jax.random.PRNGKey(0)
    k_param, k_state = jax.random.split(key)

    # Small but tiling-exercising shapes: batch splits into 2 tiles of 128.
    batch, state_space, action_space = 256, 16, 8
    params = init_actor_params(k_param, state_space, action_space)
    state = jax.random.normal(k_state, (batch, state_space), jnp.float32)

    out = actor_forward(state, params, action_space=action_space)
    out = jax.block_until_ready(out)

    ref = actor_reference(state, params, action_space)
    assert out.shape == (batch, action_space)
    assert jnp.allclose(out, ref, atol=1e-2, rtol=1e-2), (
        float(jnp.max(jnp.abs(out - ref))))

    # NOTE: the original module applies ReLU to the action output (kept as-is
    # to preserve forward semantics), even though MADDPG actors usually end
    # with tanh/softmax.
    print("KERNEL_OK")
</pallas_src>

<mosaic_0001>
module attributes {stable_mosaic.version = 11 : i64} {
  func.func @actor_kernel(%arg0: i32, %arg1: memref<128x16xf32, #tpu.memory_space<vmem>>, %arg2: memref<16x128xbf16, #tpu.memory_space<vmem>>, %arg3: memref<1x128xf32, #tpu.memory_space<vmem>>, %arg4: memref<128x128xbf16, #tpu.memory_space<vmem>>, %arg5: memref<1x128xf32, #tpu.memory_space<vmem>>, %arg6: memref<128x128xbf16, #tpu.memory_space<vmem>>, %arg7: memref<1x128xf32, #tpu.memory_space<vmem>>, %arg8: memref<128x8xf32, #tpu.memory_space<vmem>>) attributes {dimension_semantics = [#tpu.dimension_semantics<parallel>], iteration_bounds = array<i64: 2>, scalar_prefetch = 0 : i64, scratch_operands = 0 : i64, tpu.core_type = #tpu.core_type<tc>, window_params = [{transform_indices = @transform_0, window_bounds = array<i64: 128, 16>}, {pipeline_mode = #tpu.pipeline_mode<synchronous>, transform_indices = @transform_1, window_bounds = array<i64: 16, 128>}, {pipeline_mode = #tpu.pipeline_mode<synchronous>, transform_indices = @transform_2, window_bounds = array<i64: 1, 128>}, {pipeline_mode = #tpu.pipeline_mode<synchronous>, transform_indices = @transform_3, window_bounds = array<i64: 128, 128>}, {pipeline_mode = #tpu.pipeline_mode<synchronous>, transform_indices = @transform_4, window_bounds = array<i64: 1, 128>}, {pipeline_mode = #tpu.pipeline_mode<synchronous>, transform_indices = @transform_5, window_bounds = array<i64: 128, 128>}, {pipeline_mode = #tpu.pipeline_mode<synchronous>, transform_indices = @transform_6, window_bounds = array<i64: 1, 128>}, {transform_indices = @transform_7, window_bounds = array<i64: 128, 8>}]} {
    %c0 = arith.constant 0 : index
    %c0_0 = arith.constant 0 : index
    %0 = vector.load %arg1[%c0, %c0_0] : memref<128x16xf32, #tpu.memory_space<vmem>>, vector<128x16xf32>
    %1 = arith.truncf %0 : vector<128x16xf32> to vector<128x16xbf16>
    %c0_1 = arith.constant 0 : index
    %c0_2 = arith.constant 0 : index
    %2 = vector.load %arg2[%c0_1, %c0_2] : memref<16x128xbf16, #tpu.memory_space<vmem>>, vector<16x128xbf16>
    %cst = arith.constant dense<0.000000e+00> : vector<128x128xf32>
    %3 = tpu.matmul %1, %2, %cst {dimension_numbers = #tpu.dot_dimension_numbers<[1], [0], [0], [1], [0, 0, 1, 1], [], []>} : vector<128x16xbf16>, vector<16x128xbf16>, vector<128x128xf32> -> vector<128x128xf32>
    %c0_3 = arith.constant 0 : index
    %c0_4 = arith.constant 0 : index
    %4 = vector.load %arg3[%c0_3, %c0_4] : memref<1x128xf32, #tpu.memory_space<vmem>>, vector<1x128xf32>
    %5 = vector.broadcast %4 : vector<1x128xf32> to vector<128x128xf32>
    %6 = arith.addf %3, %5 : vector<128x128xf32>
    %cst_5 = arith.constant 0.000000e+00 : f32
    %7 = vector.broadcast %cst_5 : f32 to vector<128x128xf32>
    %8 = arith.maximumf %6, %7 : vector<128x128xf32>
    %9 = arith.truncf %8 : vector<128x128xf32> to vector<128x128xbf16>
    %c0_6 = arith.constant 0 : index
    %c0_7 = arith.constant 0 : index
    %10 = vector.load %arg4[%c0_6, %c0_7] : memref<128x128xbf16, #tpu.memory_space<vmem>>, vector<128x128xbf16>
    %cst_8 = arith.constant dense<0.000000e+00> : vector<128x128xf32>
    %11 = tpu.matmul %9, %10, %cst_8 {dimension_numbers = #tpu.dot_dimension_numbers<[1], [0], [0], [1], [0, 0, 1, 1], [], []>} : vector<128x128xbf16>, vector<128x128xbf16>, vector<128x128xf32> -> vector<128x128xf32>
    %c0_9 = arith.constant 0 : index
    %c0_10 = arith.constant 0 : index
    %12 = vector.load %arg5[%c0_9, %c0_10] : memref<1x128xf32, #tpu.memory_space<vmem>>, vector<1x128xf32>
    %13 = vector.broadcast %12 : vector<1x128xf32> to vector<128x128xf32>
    %14 = arith.addf %11, %13 : vector<128x128xf32>
    %cst_11 = arith.constant 0.000000e+00 : f32
    %15 = vector.broadcast %cst_11 : f32 to vector<128x128xf32>
    %16 = arith.maximumf %14, %15 : vector<128x128xf32>
    %17 = arith.truncf %16 : vector<128x128xf32> to vector<128x128xbf16>
    %c0_12 = arith.constant 0 : index
    %c0_13 = arith.constant 0 : index
    %18 = vector.load %arg6[%c0_12, %c0_13] : memref<128x128xbf16, #tpu.memory_space<vmem>>, vector<128x128xbf16>
    %cst_14 = arith.constant dense<0.000000e+00> : vector<128x128xf32>
    %19 = tpu.matmul %17, %18, %cst_14 {dimension_numbers = #tpu.dot_dimension_numbers<[1], [0], [0], [1], [0, 0, 1, 1], [], []>} : vector<128x128xbf16>, vector<128x128xbf16>, vector<128x128xf32> -> vector<128x128xf32>
    %c0_15 = arith.constant 0 : index
    %c0_16 = arith.constant 0 : index
    %20 = vector.load %arg7[%c0_15, %c0_16] : memref<1x128xf32, #tpu.memory_space<vmem>>, vector<1x128xf32>
    %21 = vector.broadcast %20 : vector<1x128xf32> to vector<128x128xf32>
    %22 = arith.addf %19, %21 : vector<128x128xf32>
    %cst_17 = arith.constant 0.000000e+00 : f32
    %23 = vector.broadcast %cst_17 : f32 to vector<128x128xf32>
    %24 = arith.maximumf %22, %23 : vector<128x128xf32>
    %25 = vector.extract_strided_slice %24 {offsets = [0, 0], sizes = [128, 8], strides = [1, 1]} : vector<128x128xf32> to vector<128x8xf32>
    %c0_18 = arith.constant 0 : index
    %c0_19 = arith.constant 0 : index
    %26 = vector.load %arg8[%c0_18, %c0_19] : memref<128x8xf32, #tpu.memory_space<vmem>>, vector<128x8xf32>
    tpu.vector_store %arg8[%c0_18, %c0_19], %25 {strides = array<i32>} : memref<128x8xf32, #tpu.memory_space<vmem>>, vector<128x8xf32>,
    return
  }
  func.func @transform_0(%arg0: i32) -> (i32, i32) {
    %c0_i32 = arith.constant 0 : i32
    %c0_i32_0 = arith.constant 0 : i32
    return %arg0, %c0_i32 : i32, i32
  }
  func.func @transform_1(%arg0: i32) -> (i32, i32) {
    %c0_i32 = arith.constant 0 : i32
    %c0_i32_0 = arith.constant 0 : i32
    %c0_i32_1 = arith.constant 0 : i32
    return %c0_i32, %c0_i32_0 : i32, i32
  }
  func.func @transform_2(%arg0: i32) -> (i32, i32) {
    %c0_i32 = arith.constant 0 : i32
    %c0_i32_0 = arith.constant 0 : i32
    %c0_i32_1 = arith.constant 0 : i32
    return %c0_i32, %c0_i32_0 : i32, i32
  }
  func.func @transform_3(%arg0: i32) -> (i32, i32) {
    %c0_i32 = arith.constant 0 : i32
    %c0_i32_0 = arith.constant 0 : i32
    %c0_i32_1 = arith.constant 0 : i32
    return %c0_i32, %c0_i32_0 : i32, i32
  }
  func.func @transform_4(%arg0: i32) -> (i32, i32) {
    %c0_i32 = arith.constant 0 : i32
    %c0_i32_0 = arith.constant 0 : i32
    %c0_i32_1 = arith.constant 0 : i32
    return %c0_i32, %c0_i32_0 : i32, i32
  }
  func.func @transform_5(%arg0: i32) -> (i32, i32) {
    %c0_i32 = arith.constant 0 : i32
    %c0_i32_0 = arith.constant 0 : i32
    %c0_i32_1 = arith.constant 0 : i32
    return %c0_i32, %c0_i32_0 : i32, i32
  }
  func.func @transform_6(%arg0: i32) -> (i32, i32) {
    %c0_i32 = arith.constant 0 : i32
    %c0_i32_0 = arith.constant 0 : i32
    %c0_i32_1 = arith.constant 0 : i32
    return %c0_i32, %c0_i32_0 : i32, i32
  }
  func.func @transform_7(%arg0: i32) -> (i32, i32) {
    %c0_i32 = arith.constant 0 : i32
    %c0_i32_0 = arith.constant 0 : i32
    return %arg0, %c0_i32 : i32, i32
  }
}

</mosaic_0001>

<bundles_post_ra>
// kernel: actor_forward.1
= control target key start
LH: loop header
LB: loop body
LE: loop exit
PB: predicated region body
PF: predicated region fallthrough
CT: control target
= control target key end

     0   :  { %s1152_s24 = smov 0   ;;  %s1314_s0 = inlined_call_operand.vmem [shape: f32[256,16], index: 0, kind: input, shape index: {}]   ;;  %s1315_s1 = inlined_call_operand.vmem [shape: bf16[16,128], index: 1, kind: input, shape index: {}]   ;;  %s1316_s2 = inlined_call_operand.vmem [shape: f32[1,128], index: 2, kind: input, shape index: {}]   ;;  %s1317_s3 = inlined_call_operand.vmem [shape: bf16[128,128], index: 3, kind: input, shape index: {}]   ;;  %s1318_s4 = inlined_call_operand.vmem [shape: f32[1,128], index: 4, kind: input, shape index: {}]   ;;  %s1319_s5 = inlined_call_operand.vmem [shape: bf16[128,128], index: 5, kind: input, shape index: {}]   ;;  %s1320_s6 = inlined_call_operand.vmem [shape: f32[1,128], index: 6, kind: input, shape index: {}]   ;;  %s1321_s7 = inlined_call_operand.vmem [shape: f32[256,8], index: 7, kind: output, shape index: {}]  }
   0x1 LB: > { %s917_s25 = sadd.s32 4294967295, %s1110_s24   ;;  %p921_p0 = scmp.ge.s32.totalorder %s1110_s24, 1  ;;  %s1110_s24 = sphi %s1152_s24, %s17_s24  }
   0x2   : > { %p238_p1 = scmp.lt.s32.totalorder %s1110_s24, 3 }
   0x4   : > { %p239_p2 = pnand %p921_p0, %p238_p1 }
   0x5   : > { %s922_s28 = sshll.u32 (!%p239_p2), %s917_s25, 4 }
   0x6   : > { %242 = sbr.rel (%p239_p2) target bundleno = 658 (0x292), region = 48  ;;  %p271_p3 = scmp.lt.s32.totalorder (!%p239_p2), %s922_s28, 31 }
   0xb   : > { %v1087_v0 = vld [vmem:[%s1315_s1] sm:$0xff]   ;;  %v1088_v1 = vld [vmem:[%s1317_s3 + $0x38] sm:$0xff]   ;;  %s1323_s28 = smov (!%p271_p3, %s922_s28), 31  ;;  %v1089_v2 = vld [vmem:[%s1317_s3 + $0x30] sm:$0xff]   ;;  %vm322_vm0 = vcmask 130048   ;;  %vm844_vm1 = vcmask 64512  }
   0xc   : > { %997 = vmatprep.subr.bf16.mxu0 %v1087_v0  ;;  %1015 = vmatprep.subr.bf16.mxu1 %v1088_v1  ;;  %s923_s10 = sshll.u32 %s1323_s28, 3  ;;  %v1090_v3 = vld [vmem:[%s1317_s3 + $0x28] sm:$0xff]   ;;  %v1091_v13 = vld [vmem:[%s1317_s3 + $0x20] sm:$0xff]   ;;  %v1092_v18 = vld [vmem:[%s1317_s3 + $0x18] sm:$0xff]  }
   0xd   : > { %998 = vmatpush3.bf16.msra.mxu0 %v1087_v0  ;;  %1016 = vmatpush3.bf16.msra.mxu1 %v1088_v1  ;;  %s1177_s13 = scalar_lea.vmem %s1314_s0, %s923_s10  ;;  %v1093_v30 = vld [vmem:[%s1317_s3 + $0x10] sm:$0xff]   ;;  %v1094_v31 = vld [vmem:[%s1317_s3 + $0x8] sm:$0xff]   ;;  %v1095_v32 = vld [vmem:[%s1317_s3] sm:$0xff]   ;;  %s1262_s9 = scalar_lea.vmem %s1321_s7, %s923_s10 }
   0xe   : > { %1017 = vmatprep.subr.bf16.mxu1 %v1089_v2  ;;  %v283_v4 = vld [vmem:[%s1177_s13] sm:$0xff]  ;;  %v284_v5 = vld [vmem:[%s1177_s13 + $0x8] sm:$0xff]  ;;  %v285_v6 = vld [vmem:[%s1177_s13 + $0x10] sm:$0xff] }
   0xf   : > { %v299_v7 = vpack.c.bf16 %v284_v5, %v283_v4  ;;  %v286_v8 = vld [vmem:[%s1177_s13 + $0x18] sm:$0xff]  ;;  %v287_v9 = vld [vmem:[%s1177_s13 + $0x20] sm:$0xff]  ;;  %v288_v10 = vld [vmem:[%s1177_s13 + $0x28] sm:$0xff] }
  0x10   : > { %v300_v11 = vpack.c.bf16 %v286_v8, %v285_v6  ;;  %v301_v12 = vpack.c.bf16 %v288_v10, %v287_v9  ;;  %v289_v14 = vld [vmem:[%s1177_s13 + $0x30] sm:$0xff]  ;;  %v290_v15 = vld [vmem:[%s1177_s13 + $0x38] sm:$0xff]  ;;  %v291_v16 = vld [vmem:[%s1177_s13 + $0x40] sm:$0xff] }
  0x11   : > { %1018 = vmatpush3.bf16.msra.mxu1 %v1089_v2  ;;  %999 = vmatprep.mubr.msk.bf16.mxu0 %vm322_vm0, %v299_v7  ;;  %v292_v17 = vld [vmem:[%s1177_s13 + $0x48] sm:$0xff]  ;;  %v302_v19 = vpack.c.bf16 %v290_v15, %v289_v14  ;;  %v293_v21 = vld [vmem:[%s1177_s13 + $0x50] sm:$0xff]  ;;  %v294_v22 = vld [vmem:[%s1177_s13 + $0x58] sm:$0xff] }
  0x12   : > { %1019 = vmatprep.subr.bf16.mxu1 %v1090_v3  ;;  %1000 = vmatmul.mubr.msk.bf16.vlgmr.msra.gmra.mxu0 %vm322_vm0, %v300_v11  ;;  %v303_v20 = vpack.c.bf16 %v292_v17, %v291_v16  ;;  %v295_v23 = vld [vmem:[%s1177_s13 + $0x60] sm:$0xff]  ;;  %v296_v24 = vld [vmem:[%s1177_s13 + $0x68] sm:$0xff]  ;;  %v304_v25 = vpack.c.bf16 %v294_v22, %v293_v21  ;;  %v297_v27 = vld [vmem:[%s1177_s13 + $0x70] sm:$0xff] }
  0x13   : > { %1003 = vmatprep.mubr.msk.bf16.mxu0 %vm322_vm0, %v301_v12  ;;  %v305_v26 = vpack.c.bf16 %v296_v24, %v295_v23  ;;  %v298_v28 = vld [vmem:[%s1177_s13 + $0x78] sm:$0xff]  ;;  %v1097_v34 = vld [vmem:[%s1319_s5 + $0x30] sm:$0xff]   ;;  %v1098_v35 = vld [vmem:[%s1319_s5 + $0x28] sm:$0xff]  }
  0x14   : > { %v306_v29 = vpack.c.bf16 %v298_v28, %v297_v27  ;;  %v1096_v33 = vld [vmem:[%s1319_s5 + $0x38] sm:$0xff]   ;;  %v1099_v36 = vld [vmem:[%s1319_s5 + $0x20] sm:$0xff]  }
  0x15   : > { %1020 = vmatpush3.bf16.msra.mxu1 %v1090_v3  ;;  %1047 = vmatprep.subr.bf16.mxu0 %v1096_v33  ;;  %v1100_v37 = vld [vmem:[%s1319_s5 + $0x18] sm:$0xff]   ;;  %v926_v40 = vld [vmem:[%s1316_s2] ss:$0 sm:$0xff] }
  0x16   : > { %1021 = vmatprep.subr.bf16.mxu1 %v1091_v13  ;;  %1048 = vmatpush3.bf16.msra.mxu0 %v1096_v33  ;;  %v1103_v33 = vld [vmem:[%s1319_s5] sm:$0xff]  }
  0x17   : > { %1049 = vmatprep.subr.bf16.mxu0 %v1097_v34 }
  0x19   : > { %1022 = vmatpush3.bf16.msra.mxu1 %v1091_v13 }
  0x1a   : > { %1023 = vmatprep.subr.bf16.mxu1 %v1092_v18  ;;  %1004 = vmatmul.mubr.msk.bf16.gmra.mxu0 %vm322_vm0, %v302_v19 }
  0x1b   : > { %1007 = vmatprep.mubr.msk.bf16.mxu0 %vm322_vm0, %v303_v20  ;;  %1050 = vmatpush3.bf16.msra.mxu0 %v1097_v34 }
  0x1c   : > { %1051 = vmatprep.subr.bf16.mxu0 %v1098_v35 }
  0x1d   : > { %1024 = vmatpush3.bf16.msra.mxu1 %v1092_v18 }
  0x1e   : > { %1025 = vmatprep.subr.bf16.mxu1 %v1093_v30 }
  0x1f   : > { %1052 = vmatpush3.bf16.msra.mxu0 %v1098_v35 }
  0x20   : > { %1053 = vmatprep.subr.bf16.mxu0 %v1099_v36 }
  0x21   : > { %1026 = vmatpush3.bf16.msra.mxu1 %v1093_v30 }
  0x22   : > { %1008 = vmatmul.mubr.msk.bf16.gmra.mxu0 %vm322_vm0, %v304_v25  ;;  %1027 = vmatprep.subr.bf16.mxu1 %v1094_v31 }
  0x23   : > { %1011 = vmatprep.mubr.msk.bf16.mxu0 %vm322_vm0, %v305_v26  ;;  %1054 = vmatpush3.bf16.msra.mxu0 %v1099_v36  ;;  %v936_v36 = vld [vmem:[%s1318_s4] ss:$0 sm:$0xff] }
  0x24   : > { %1055 = vmatprep.subr.bf16.mxu0 %v1100_v37 }
  0x25   : > { %1028 = vmatpush3.bf16.msra.mxu1 %v1094_v31  ;;  %v1101_v31 = vld [vmem:[%s1319_s5 + $0x10] sm:$0xff]  }
  0x26   : > { %1029 = vmatprep.subr.bf16.mxu1 %v1095_v32 }
  0x27   : > { %1056 = vmatpush3.bf16.msra.mxu0 %v1100_v37 }
  0x28   : > { %1057 = vmatprep.subr.bf16.mxu0 %v1101_v31 }
  0x29   : > { %1030 = vmatpush3.bf16.msra.mxu1 %v1095_v32  ;;  %v1102_v32 = vld [vmem:[%s1319_s5 + $0x8] sm:$0xff]  }
  0x2a   : > { %1012 = vmatmul.mubr.msk.bf16.gmra.mxu0 %vm322_vm0, %v306_v29 }
  0x2b   : > { %1058 = vmatpush3.bf16.msra.mxu0 %v1101_v31 }
  0x2c   : > { %1059 = vmatprep.subr.bf16.mxu0 %v1102_v32 }
  0x2f   : > { %1060 = vmatpush3.bf16.msra.mxu0 %v1102_v32 }
  0x30   : > { %1061 = vmatprep.subr.bf16.mxu0 %v1103_v33 }
  0x33   : > { %1062 = vmatpush3.bf16.msra.mxu0 %v1103_v33 }
  0xd2   : > { %v1001_v38 = vpop.f32.mrf.mxu0 }
  0xd3   : > { %v390_v44 = vadd.f32 %v1001_v38, %v926_v40 }
  0xd4   : > { %v381_v39 = vpop.f32.mrf.mxu0 }
  0xd5   : > { %v382_v42 = vadd.f32 %v926_v40, %v381_v39  ;;  %v446_v51 = vmax.f32 %v390_v44, 0.0 }
  0xd6   : > { %v1002_v41 = vpop.f32.mrf.mxu0 }
  0xd7   : > { %v393_v43 = vadd.f32 %v1002_v41, %v926_v40  ;;  %v444_v49 = vmax.f32 %v382_v42, 0.0 }
  0xd8   : > { %v384_v45 = vpop.f32.mrf.mxu0 }
  0xd9   : > { %v385_v46 = vadd.f32 %v926_v40, %v384_v45  ;;  %v447_v47 = vmax.f32 %v393_v43, 0.0 }
  0xda   : > { %v1005_v48 = vpop.f32.mrf.mxu0 }
  0xdb   : > { %v445_v50 = vmax.f32 %v385_v46, 0.0  ;;  %v461_v54 = vpack.c.bf16 %v447_v47, %v446_v51  ;;  %v406_v58 = vadd.f32 %v1005_v48, %v926_v40 }
  0xdc   : > { %v397_v52 = vpop.f32.mrf.mxu0 }
  0xdd   : > { %v460_v53 = vpack.c.bf16 %v445_v50, %v444_v49  ;;  %v398_v56 = vadd.f32 %v926_v40, %v397_v52  ;;  %v450_v1 = vmax.f32 %v406_v58, 0.0 }
  0xde   : > { %v1006_v55 = vpop.f32.mrf.mxu0 }
  0xdf   : > { %v409_v57 = vadd.f32 %v1006_v55, %v926_v40  ;;  %1031 = vmatprep.mubr.bf16.mxu1 %v460_v53  ;;  %v448_v63 = vmax.f32 %v398_v56, 0.0 }
  0xe0   : > { %v400_v59 = vpop.f32.mrf.mxu0  ;;  %1032 = vmatmul.mubr.bf16.vlgmr.msra.gmra.mxu1 %v461_v54 }
  0xe1   : > { %v401_v60 = vadd.f32 %v926_v40, %v400_v59  ;;  %v451_v61 = vmax.f32 %v409_v57, 0.0 }
  0xe2   : > { %v1009_v62 = vpop.f32.mrf.mxu0 }
  0xe3   : > { %v449_v0 = vmax.f32 %v401_v60, 0.0  ;;  %v463_v4 = vpack.c.bf16 %v451_v61, %v450_v1  ;;  %v422_v8 = vadd.f32 %v1009_v62, %v926_v40 }
  0xe4   : > { %v413_v2 = vpop.f32.mrf.mxu0 }
  0xe5   : > { %v462_v3 = vpack.c.bf16 %v449_v0, %v448_v63  ;;  %v414_v6 = vadd.f32 %v926_v40, %v413_v2  ;;  %v454_v15 = vmax.f32 %v422_v8, 0.0 }
  0xe6   : > { %v1010_v5 = vpop.f32.mrf.mxu0 }
  0xe7   : > { %v425_v7 = vadd.f32 %v1010_v5, %v926_v40  ;;  %1035 = vmatprep.mubr.bf16.mxu1 %v462_v3  ;;  %v452_v13 = vmax.f32 %v414_v6, 0.0 }
  0xe8   : > { %v416_v9 = vpop.f32.mrf.mxu0  ;;  %1036 = vmatmul.mubr.bf16.gmra.mxu1 %v463_v4 }
  0xe9   : > { %v417_v10 = vadd.f32 %v926_v40, %v416_v9  ;;  %v455_v11 = vmax.f32 %v425_v7, 0.0 }
  0xea   : > { %v1013_v12 = vpop.f32.mrf.mxu0 }
  0xeb   : > { %v453_v14 = vmax.f32 %v417_v10, 0.0  ;;  %v465_v18 = vpack.c.bf16 %v455_v11, %v454_v15  ;;  %v438_v22 = vadd.f32 %v1013_v12, %v926_v40 }
  0xec   : > { %v429_v16 = vpop.f32.mrf.mxu0 }
  0xed   : > { %v464_v17 = vpack.c.bf16 %v453_v14, %v452_v13  ;;  %v430_v20 = vadd.f32 %v926_v40, %v429_v16  ;;  %v458_v28 = vmax.f32 %v438_v22, 0.0 }
  0xee   : > { %v1014_v19 = vpop.f32.mrf.mxu0 }
  0xef   : > { %v441_v21 = vadd.f32 %v1014_v19, %v926_v40  ;;  %1039 = vmatprep.mubr.bf16.mxu1 %v464_v17  ;;  %v456_v26 = vmax.f32 %v430_v20, 0.0 }
  0xf0   : > { %v432_v23 = vpop.f32.mrf.mxu0  ;;  %1040 = vmatmul.mubr.bf16.gmra.mxu1 %v465_v18 }
  0xf1   : > { %v433_v24 = vadd.f32 %v926_v40, %v432_v23  ;;  %v459_v25 = vmax.f32 %v441_v21, 0.0 }
  0xf3   : > { %v457_v27 = vmax.f32 %v433_v24, 0.0  ;;  %v467_v30 = vpack.c.bf16 %v459_v25, %v458_v28 }
  0xf5   : > { %v466_v29 = vpack.c.bf16 %v457_v27, %v456_v26  ;;  %v1254_v27 = vld [vmem:[%s1320_s6] ss:$0 sm:$0xff] }
  0xf7   : > { %1043 = vmatprep.mubr.bf16.mxu1 %v466_v29 }
  0xf8   : > { %1044 = vmatmul.mubr.bf16.gmra.mxu1 %v467_v30 }
 0x1a0   : > { %v1033_v34 = vpop.f32.mrf.mxu1 }
 0x1a1   : > { %v582_v40 = vadd.f32 %v1033_v34, %v936_v36 }
 0x1a2   : > { %v573_v35 = vpop.f32.mrf.mxu1 }
 0x1a3   : > { %v574_v38 = vadd.f32 %v936_v36, %v573_v35  ;;  %v638_v47 = vmax.f32 %v582_v40, 0.0 }
 0x1a4   : > { %v1034_v37 = vpop.f32.mrf.mxu1 }
 0x1a5   : > { %v585_v39 = vadd.f32 %v1034_v37, %v936_v36  ;;  %v636_v45 = vmax.f32 %v574_v38, 0.0 }
 0x1a6   : > { %v576_v41 = vpop.f32.mrf.mxu1 }
 0x1a7   : > { %v577_v42 = vadd.f32 %v936_v36, %v576_v41  ;;  %v639_v43 = vmax.f32 %v585_v39, 0.0 }
 0x1a8   : > { %v1037_v44 = vpop.f32.mrf.mxu1 }
 0x1a9   : > { %v637_v46 = vmax.f32 %v577_v42, 0.0  ;;  %v653_v50 = vpack.c.bf16 %v639_v43, %v638_v47  ;;  %v598_v54 = vadd.f32 %v1037_v44, %v936_v36 }
 0x1aa   : > { %v589_v48 = vpop.f32.mrf.mxu1 }
 0x1ab   : > { %v652_v49 = vpack.c.bf16 %v637_v46, %v636_v45  ;;  %v590_v52 = vadd.f32 %v936_v36, %v589_v48  ;;  %v642_v61 = vmax.f32 %v598_v54, 0.0 }
 0x1ac   : > { %v1038_v51 = vpop.f32.mrf.mxu1 }
 0x1ad   : > { %v601_v53 = vadd.f32 %v1038_v51, %v936_v36  ;;  %1063 = vmatprep.mubr.bf16.mxu0 %v652_v49  ;;  %v640_v59 = vmax.f32 %v590_v52, 0.0 }
 0x1ae   : > { %v592_v55 = vpop.f32.mrf.mxu1  ;;  %1064 = vmatmul.mubr.bf16.vlgmr.msra.gmra.mxu0 %v653_v50 }
 0x1af   : > { %v593_v56 = vadd.f32 %v936_v36, %v592_v55  ;;  %v643_v57 = vmax.f32 %v601_v53, 0.0 }
 0x1b0   : > { %v1041_v58 = vpop.f32.mrf.mxu1 }
 0x1b1   : > { %v641_v60 = vmax.f32 %v593_v56, 0.0  ;;  %v655_v0 = vpack.c.bf16 %v643_v57, %v642_v61  ;;  %v614_v4 = vadd.f32 %v1041_v58, %v936_v36 }
 0x1b2   : > { %v605_v62 = vpop.f32.mrf.mxu1 }
 0x1b3   : > { %v654_v63 = vpack.c.bf16 %v641_v60, %v640_v59  ;;  %v606_v2 = vadd.f32 %v936_v36, %v605_v62  ;;  %v646_v11 = vmax.f32 %v614_v4, 0.0 }
 0x1b4   : > { %v1042_v1 = vpop.f32.mrf.mxu1 }
 0x1b5   : > { %v617_v3 = vadd.f32 %v1042_v1, %v936_v36  ;;  %1067 = vmatprep.mubr.bf16.mxu0 %v654_v63  ;;  %v644_v9 = vmax.f32 %v606_v2, 0.0 }
 0x1b6   : > { %v608_v5 = vpop.f32.mrf.mxu1  ;;  %1068 = vmatmul.mubr.bf16.gmra.mxu0 %v655_v0 }
 0x1b7   : > { %v609_v6 = vadd.f32 %v936_v36, %v608_v5  ;;  %v647_v7 = vmax.f32 %v617_v3, 0.0 }
 0x1b8   : > { %v1045_v8 = vpop.f32.mrf.mxu1 }
 0x1b9   : > { %v645_v10 = vmax.f32 %v609_v6, 0.0  ;;  %v657_v14 = vpack.c.bf16 %v647_v7, %v646_v11  ;;  %v630_v18 = vadd.f32 %v1045_v8, %v936_v36 }
 0x1ba   : > { %v621_v12 = vpop.f32.mrf.mxu1 }
 0x1bb   : > { %v656_v13 = vpack.c.bf16 %v645_v10, %v644_v9  ;;  %v622_v16 = vadd.f32 %v936_v36, %v621_v12  ;;  %v650_v24 = vmax.f32 %v630_v18, 0.0 }
 0x1bc   : > { %v1046_v15 = vpop.f32.mrf.mxu1 }
 0x1bd   : > { %v633_v17 = vadd.f32 %v1046_v15, %v936_v36  ;;  %1071 = vmatprep.mubr.bf16.mxu0 %v656_v13  ;;  %v648_v22 = vmax.f32 %v622_v16, 0.0 }
 0x1be   : > { %v624_v19 = vpop.f32.mrf.mxu1  ;;  %1072 = vmatmul.mubr.bf16.gmra.mxu0 %v657_v14 }
 0x1bf   : > { %v625_v20 = vadd.f32 %v936_v36, %v624_v19  ;;  %v651_v21 = vmax.f32 %v633_v17, 0.0 }
 0x1c1   : > { %v649_v23 = vmax.f32 %v625_v20, 0.0  ;;  %v659_v26 = vpack.c.bf16 %v651_v21, %v650_v24 }
 0x1c3   : > { %v658_v25 = vpack.c.bf16 %v649_v23, %v648_v22 }
 0x1c5   : > { %1075 = vmatprep.mubr.bf16.mxu0 %v658_v25 }
 0x1c6   : > { %1076 = vmatmul.mubr.bf16.gmra.mxu0 %v659_v26 }
 0x26e   : > { %v1065_v28 = vpop.f32.mrf.mxu0 }
 0x26f   : > { %v774_v29 = vadd.f32 %v1065_v28, %v1254_v27 }
 0x270   : > { %v765_v30 = vpop.f32.mrf.mxu0 }
 0x271   : > { %v830_v31 = vmax.f32 %v774_v29, 0.0  ;;  %v766_v32 = vadd.f32 %v1254_v27, %v765_v30 }
 0x272   : > { %v1066_v33 = vpop.f32.mrf.mxu0 }
 0x273   : > { %847 = vst.msk [vmem:[%s1262_s9 + $0x10] sm:$0xff] %vm844_vm1, %v830_v31  ;;  %v828_v34 = vmax.f32 %v766_v32, 0.0  ;;  %v777_v35 = vadd.f32 %v1066_v33, %v1254_v27 }
 0x274   : > { %v768_v36 = vpop.f32.mrf.mxu0 }
 0x275   : > { %845 = vst.msk [vmem:[%s1262_s9] sm:$0xff] %vm844_vm1, %v828_v34  ;;  %v831_v37 = vmax.f32 %v777_v35, 0.0  ;;  %v769_v38 = vadd.f32 %v1254_v27, %v768_v36 }
 0x276   : > { %v1069_v39 = vpop.f32.mrf.mxu0 }
 0x277   : > { %848 = vst.msk [vmem:[%s1262_s9 + $0x18] sm:$0xff] %vm844_vm1, %v831_v37  ;;  %v829_v40 = vmax.f32 %v769_v38, 0.0  ;;  %v790_v41 = vadd.f32 %v1069_v39, %v1254_v27 }
 0x278   : > { %v781_v42 = vpop.f32.mrf.mxu0 }
 0x279   : > { %846 = vst.msk [vmem:[%s1262_s9 + $0x8] sm:$0xff] %vm844_vm1, %v829_v40  ;;  %v834_v43 = vmax.f32 %v790_v41, 0.0  ;;  %v782_v44 = vadd.f32 %v1254_v27, %v781_v42 }
 0x27a   : > { %v1070_v45 = vpop.f32.mrf.mxu0 }
 0x27b   : > { %851 = vst.msk [vmem:[%s1262_s9 + $0x30] sm:$0xff] %vm844_vm1, %v834_v43  ;;  %v832_v46 = vmax.f32 %v782_v44, 0.0  ;;  %v793_v47 = vadd.f32 %v1070_v45, %v1254_v27 }
 0x27c   : > { %v784_v48 = vpop.f32.mrf.mxu0 }
 0x27d   : > { %849 = vst.msk [vmem:[%s1262_s9 + $0x20] sm:$0xff] %vm844_vm1, %v832_v46  ;;  %v835_v49 = vmax.f32 %v793_v47, 0.0  ;;  %v785_v50 = vadd.f32 %v1254_v27, %v784_v48 }
 0x27e   : > { %v1073_v51 = vpop.f32.mrf.mxu0 }
 0x27f   : > { %852 = vst.msk [vmem:[%s1262_s9 + $0x38] sm:$0xff] %vm844_vm1, %v835_v49  ;;  %v833_v52 = vmax.f32 %v785_v50, 0.0  ;;  %v806_v53 = vadd.f32 %v1073_v51, %v1254_v27 }
 0x280   : > { %v797_v54 = vpop.f32.mrf.mxu0 }
 0x281   : > { %850 = vst.msk [vmem:[%s1262_s9 + $0x28] sm:$0xff] %vm844_vm1, %v833_v52  ;;  %v838_v55 = vmax.f32 %v806_v53, 0.0  ;;  %v798_v56 = vadd.f32 %v1254_v27, %v797_v54 }
 0x282   : > { %v1074_v57 = vpop.f32.mrf.mxu0 }
 0x283   : > { %855 = vst.msk [vmem:[%s1262_s9 + $0x50] sm:$0xff] %vm844_vm1, %v838_v55  ;;  %v836_v58 = vmax.f32 %v798_v56, 0.0  ;;  %v809_v59 = vadd.f32 %v1074_v57, %v1254_v27 }
 0x284   : > { %v800_v60 = vpop.f32.mrf.mxu0 }
 0x285   : > { %853 = vst.msk [vmem:[%s1262_s9 + $0x40] sm:$0xff] %vm844_vm1, %v836_v58  ;;  %v839_v61 = vmax.f32 %v809_v59, 0.0  ;;  %v801_v62 = vadd.f32 %v1254_v27, %v800_v60 }
 0x286   : > { %v1077_v63 = vpop.f32.mrf.mxu0 }
 0x287   : > { %856 = vst.msk [vmem:[%s1262_s9 + $0x58] sm:$0xff] %vm844_vm1, %v839_v61  ;;  %v837_v0 = vmax.f32 %v801_v62, 0.0  ;;  %v822_v1 = vadd.f32 %v1077_v63, %v1254_v27 }
 0x288   : > { %v813_v2 = vpop.f32.mrf.mxu0 }
 0x289   : > { %854 = vst.msk [vmem:[%s1262_s9 + $0x48] sm:$0xff] %vm844_vm1, %v837_v0  ;;  %v842_v3 = vmax.f32 %v822_v1, 0.0  ;;  %v814_v4 = vadd.f32 %v1254_v27, %v813_v2 }
 0x28a   : > { %v1078_v5 = vpop.f32.mrf.mxu0 }
 0x28b   : > { %859 = vst.msk [vmem:[%s1262_s9 + $0x70] sm:$0xff] %vm844_vm1, %v842_v3  ;;  %v840_v6 = vmax.f32 %v814_v4, 0.0  ;;  %v825_v7 = vadd.f32 %v1078_v5, %v1254_v27 }
 0x28c   : > { %v816_v8 = vpop.f32.mrf.mxu0 }
 0x28d   : > { %857 = vst.msk [vmem:[%s1262_s9 + $0x60] sm:$0xff] %vm844_vm1, %v840_v6  ;;  %v843_v9 = vmax.f32 %v825_v7, 0.0  ;;  %v817_v10 = vadd.f32 %v1254_v27, %v816_v8 }
 0x28f   : > { %860 = vst.msk [vmem:[%s1262_s9 + $0x78] sm:$0xff] %vm844_vm1, %v843_v9  ;;  %v841_v11 = vmax.f32 %v817_v10, 0.0 }
 0x291   : > { %858 = vst.msk [vmem:[%s1262_s9 + $0x68] sm:$0xff] %vm844_vm1, %v841_v11 }
 0x292 PF: > { %s17_s24 = sadd.s32 1, %s1110_s24  }
 0x293   : > { %p14_p4 = scmp.ge.s32.totalorder %s17_s24, 4  }
 0x295   :  { %16 = sbr.rel (!%p14_p4) target bundleno = 1 (0x1), region = 78 }

</bundles_post_ra>
